<compile_context>
chip_gen: v7x
topology: tpu7x:2x2x1
jax: 0.10.0
libtpu: 0.0.40
codegen_flags: <defaults>
</compile_context>

<pallas_src>
import functools

import jax
import jax.numpy as jnp
from jax import lax
from jax.experimental import pallas as pl
from jax.experimental.pallas import tpu as pltpu


def _mil_kernel(x_ref, w1_ref, w2_ref, b2_ref, o_ref, acc_ref, *, mode, n, tn, m_dim):
    """Grid = (n_tiles,) over the instance axis (reduction / 'arbitrary')."""
    i = pl.program_id(0)
    last = pl.num_programs(0) - 1

    @pl.when(i == 0)
    def _init():
        # Zero init is valid for 'max' too ONLY because ReLU guarantees h >= 0.
        acc_ref[...] = jnp.zeros_like(acc_ref)

    # DimReduction: Linear (no bias). bf16 operands on the MXU, f32 accumulation.
    # The x tile arrives as f32; cast here (cheap VPU, hidden under the DMA).
    h = jnp.dot(x_ref[...].astype(jnp.bfloat16), w1_ref[...],
                preferred_element_type=jnp.float32)
    h = jnp.maximum(h, 0.0)  # ReLU, f32 on the VPU

    def accumulate(hv):
        # Per-tile partial pool kept 8-row (sublane) shaped: pure VPU adds/max
        # that co-issue next to the MXU; cross-sublane reduce deferred to finalize.
        if tn % 8 == 0:
            slabs = hv.reshape(tn // 8, 8, m_dim)
            if mode == "max":
                acc_ref[...] = jnp.maximum(acc_ref[...], jnp.max(slabs, axis=0))
            else:  # mean
                acc_ref[...] = acc_ref[...] + jnp.sum(slabs, axis=0)
        else:  # single odd-sized tile (n <= tn and n % 8 != 0)
            if mode == "max":
                acc_ref[0:1, :] = jnp.maximum(
                    acc_ref[0:1, :], jnp.max(hv, axis=0, keepdims=True))
            else:
                acc_ref[0:1, :] = acc_ref[0:1, :] + jnp.sum(hv, axis=0, keepdims=True)

    if n % tn != 0:
        # Mask only on the last tile: OOB rows of that x block are garbage and
        # must be zeroed (0 is a valid neutral for both mean and max, h >= 0).
        @pl.when(i != last)
        def _full_tiles():
            accumulate(h)

        @pl.when(i == last)
        def _tail_tile():
            row = i * tn + lax.broadcasted_iota(jnp.int32, (tn, 1), 0)
            accumulate(jnp.where(row < n, h, 0.0))
    else:
        accumulate(h)

    @pl.when(i == last)
    def _finalize():
        if mode == "max":
            pooled = jnp.max(acc_ref[...], axis=0, keepdims=True)
        else:  # mean: divide by the true N, not tiles*tn
            pooled = jnp.sum(acc_ref[...], axis=0, keepdims=True) * (1.0 / n)
        # Classifier_1fc fused into the finalize (droprate=0 -> no dropout).
        logit = jnp.dot(pooled, w2_ref[...], preferred_element_type=jnp.float32)
        o_ref[...] = (logit + b2_ref[...]).astype(o_ref.dtype)


def _pick_tn(n, in_features, m_dim, tn_req, vmem_budget_bytes=24 << 20):
    """Largest instance tile (multiple of 8 unless it covers all of N) that fits
    a conservative VMEM budget (covers v7x's smaller VMEM / 32 MiB scoped limit)."""
    tn_eff = n if n <= tn_req else tn_req

    def vmem_bytes(t):
        return (2 * t * in_features * 4        # x tile, f32, double-buffered
                + t * in_features * 2          # in-kernel bf16 copy of the tile
                + 2 * in_features * m_dim * 2  # w1 (bf16) block allocation
                + t * m_dim * 4                # h intermediate
                + 8 * m_dim * 4)               # pooling accumulator

    if tn_eff < n:
        tn_eff = max(8, (tn_eff // 8) * 8)
        while tn_eff > 8 and vmem_bytes(tn_eff) > vmem_budget_bytes:
            tn_eff = max(8, (tn_eff // 2 // 8) * 8)
    return tn_eff


def nonparam_mil(x, w1, w2, b2, *, mode="mean", tn=1024):
    """Forward pass of NonparamMIL.

    x : (N, in_features)      bag of instance features (f32; cast to bf16 in-kernel)
    w1: (in_features, m_dim)  DimReduction weight (stored pre-transposed)
    w2: (m_dim, num_cls)      classifier weight (stored pre-transposed)
    b2: (1, num_cls)          classifier bias
    """
    n, in_features = x.shape
    m_dim = w1.shape[1]
    num_cls = w2.shape[1]
    assert w1.shape == (in_features, m_dim)
    assert w2.shape == (m_dim, num_cls)
    assert b2.shape == (1, num_cls)
    assert mode in ("mean", "max")
    # TODO(synk): if in_features*m_dim ever exceeds a few MiB of VMEM, add an
    # m_dim-chunked fallback; typical DTFD shapes (<=2048 x 512) fit easily.
    assert 2 * in_features * m_dim * 2 < (16 << 20), "w1 block too large for VMEM"

    tn_eff = _pick_tn(n, in_features, m_dim, tn)
    n_tiles = pl.cdiv(n, tn_eff)

    kernel = functools.partial(_mil_kernel, mode=mode, n=n, tn=tn_eff, m_dim=m_dim)

    cost = pl.CostEstimate(
        flops=2 * n * in_features * m_dim + 2 * m_dim * num_cls,
        transcendentals=0,
        bytes_accessed=(n * in_features * 4          # x streamed once, f32
                        + in_features * m_dim * 2    # w1 bf16
                        + m_dim * num_cls * 4 + num_cls * 4 + num_cls * 4),
    )

    logit = pl.pallas_call(
        kernel,
        out_shape=jax.ShapeDtypeStruct((1, num_cls), jnp.float32),
        grid_spec=pltpu.PrefetchScalarGridSpec(
            num_scalar_prefetch=0,
            grid=(n_tiles,),
            in_specs=[
                pl.BlockSpec((tn_eff, in_features), lambda i: (i, 0)),   # x streamed over N
                pl.BlockSpec((in_features, m_dim), lambda i: (0, 0)),    # w1 resident
                pl.BlockSpec((m_dim, num_cls), lambda i: (0, 0)),        # w2 resident
                pl.BlockSpec((1, num_cls), lambda i: (0, 0)),            # b2 resident
            ],
            out_specs=pl.BlockSpec((1, num_cls), lambda i: (0, 0)),
            scratch_shapes=[pltpu.VMEM((8, m_dim), jnp.float32)],
        ),
        compiler_params=pltpu.CompilerParams(dimension_semantics=("arbitrary",)),
        cost_estimate=cost,
    )(x, w1.astype(jnp.bfloat16), w2.astype(jnp.float32), b2.astype(jnp.float32))
    return logit


def reference(x, w1, w2, b2, mode="mean"):
    # Mirror kernel numerics for the big matmul: bf16-cast operands, f32 math.
    xh = x.astype(jnp.bfloat16).astype(jnp.float32)
    wh = w1.astype(jnp.bfloat16).astype(jnp.float32)
    h = jnp.maximum(xh @ wh, 0.0)
    if mode == "max":
        p = jnp.max(h, axis=0, keepdims=True)
    else:
        p = jnp.mean(h, axis=0, keepdims=True)
    return p @ w2 + b2


if __name__ == "__main__":
    # Small shapes consistent with the module (num_cls=2). Three configs exercise:
    # (a) tiled path with a masked tail (3 tiles of 16 over N=40),
    # (b) single full-bag tile (N=40 <= tn), (c) single odd-sized tile (N=10).
    in_features, m_dim, num_cls = 64, 256, 2

    key = jax.random.PRNGKey(0)
    kx, k1, k2, kb = jax.random.split(key, 4)
    w1 = jax.random.normal(k1, (in_features, m_dim), dtype=jnp.float32) * 0.05
    w2 = jax.random.normal(k2, (m_dim, num_cls), dtype=jnp.float32) * 0.05
    b2 = jax.random.normal(kb, (1, num_cls), dtype=jnp.float32) * 0.01

    for N, tn in ((40, 16), (40, 1024), (10, 1024)):
        x = jax.random.normal(kx, (N, in_features), dtype=jnp.float32)
        for mode in ("mean", "max"):
            out = jax.block_until_ready(nonparam_mil(x, w1, w2, b2, mode=mode, tn=tn))
            ref = reference(x, w1, w2, b2, mode=mode)
            assert out.shape == (1, num_cls), out.shape
            assert jnp.allclose(out, ref, atol=2e-3, rtol=2e-3), (N, tn, mode, out, ref)

    print("KERNEL_OK")
</pallas_src>

<mosaic_0001>
module attributes {stable_mosaic.version = 11 : i64} {
  func.func @_mil_kernel(%arg0: i32, %arg1: memref<16x64xf32, #tpu.memory_space<vmem>>, %arg2: memref<64x256xbf16, #tpu.memory_space<vmem>>, %arg3: memref<256x2xf32, #tpu.memory_space<vmem>>, %arg4: memref<1x2xf32, #tpu.memory_space<vmem>>, %arg5: memref<1x2xf32, #tpu.memory_space<vmem>>, %arg6: memref<8x256xf32, #tpu.memory_space<vmem>>) attributes {dimension_semantics = [#tpu.dimension_semantics<arbitrary>], iteration_bounds = array<i64: 3>, scalar_prefetch = 0 : i64, scratch_operands = 1 : i64, tpu.core_type = #tpu.core_type<tc>, window_params = [{transform_indices = @transform_0, window_bounds = array<i64: 16, 64>}, {pipeline_mode = #tpu.pipeline_mode<synchronous>, transform_indices = @transform_1, window_bounds = array<i64: 64, 256>}, {pipeline_mode = #tpu.pipeline_mode<synchronous>, transform_indices = @transform_2, window_bounds = array<i64: 256, 2>}, {pipeline_mode = #tpu.pipeline_mode<synchronous>, transform_indices = @transform_3, window_bounds = array<i64: 1, 2>}, {pipeline_mode = #tpu.pipeline_mode<synchronous>, transform_indices = @transform_4, window_bounds = array<i64: 1, 2>}]} {
    %c0_i32 = arith.constant 0 : i32
    %0 = arith.cmpi eq, %arg0, %c0_i32 : i32
    %1 = arith.extui %0 : i1 to i32
    %c0_i32_0 = arith.constant 0 : i32
    %2 = arith.cmpi ne, %1, %c0_i32_0 : i32
    scf.if %2 {
      %cst_10 = arith.constant 0.000000e+00 : f32
      %18 = vector.broadcast %cst_10 : f32 to vector<8x256xf32>
      %c0_11 = arith.constant 0 : index
      %c0_12 = arith.constant 0 : index
      %19 = vector.load %arg6[%c0_11, %c0_12] : memref<8x256xf32, #tpu.memory_space<vmem>>, vector<8x256xf32>
      tpu.vector_store %arg6[%c0_11, %c0_12], %18 {strides = array<i32>} : memref<8x256xf32, #tpu.memory_space<vmem>>, vector<8x256xf32>,
    } else {
    }
    %c0 = arith.constant 0 : index
    %c0_1 = arith.constant 0 : index
    %3 = vector.load %arg1[%c0, %c0_1] : memref<16x64xf32, #tpu.memory_space<vmem>>, vector<16x64xf32>
    %4 = arith.truncf %3 : vector<16x64xf32> to vector<16x64xbf16>
    %c0_2 = arith.constant 0 : index
    %c0_3 = arith.constant 0 : index
    %5 = vector.load %arg2[%c0_2, %c0_3] : memref<64x256xbf16, #tpu.memory_space<vmem>>, vector<64x256xbf16>
    %cst = arith.constant dense<0.000000e+00> : vector<16x256xf32>
    %6 = tpu.matmul %4, %5, %cst {dimension_numbers = #tpu.dot_dimension_numbers<[1], [0], [0], [1], [0, 0, 1, 1], [], []>} : vector<16x64xbf16>, vector<64x256xbf16>, vector<16x256xf32> -> vector<16x256xf32>
    %cst_4 = arith.constant 0.000000e+00 : f32
    %7 = vector.broadcast %cst_4 : f32 to vector<16x256xf32>
    %8 = arith.maximumf %6, %7 : vector<16x256xf32>
    %c2_i32 = arith.constant 2 : i32
    %9 = arith.cmpi ne, %arg0, %c2_i32 : i32
    %10 = arith.extui %9 : i1 to i32
    %c0_i32_5 = arith.constant 0 : i32
    %11 = arith.cmpi ne, %10, %c0_i32_5 : i32
    scf.if %11 {
      %18 = vector.shape_cast %8 : vector<16x256xf32> to vector<2x8x256xf32>
      %c0_10 = arith.constant 0 : index
      %c0_11 = arith.constant 0 : index
      %19 = vector.load %arg6[%c0_10, %c0_11] : memref<8x256xf32, #tpu.memory_space<vmem>>, vector<8x256xf32>
      %cst_12 = arith.constant dense<0.000000e+00> : vector<8x256xf32>
      %20 = vector.multi_reduction <add>, %18, %cst_12 [0] : vector<2x8x256xf32> to vector<8x256xf32>
      %21 = arith.addf %19, %20 : vector<8x256xf32>
      %c0_13 = arith.constant 0 : index
      %c0_14 = arith.constant 0 : index
      %22 = vector.load %arg6[%c0_13, %c0_14] : memref<8x256xf32, #tpu.memory_space<vmem>>, vector<8x256xf32>
      tpu.vector_store %arg6[%c0_13, %c0_14], %21 {strides = array<i32>} : memref<8x256xf32, #tpu.memory_space<vmem>>, vector<8x256xf32>,
    } else {
    }
    %c2_i32_6 = arith.constant 2 : i32
    %12 = arith.cmpi eq, %arg0, %c2_i32_6 : i32
    %13 = arith.extui %12 : i1 to i32
    %c0_i32_7 = arith.constant 0 : i32
    %14 = arith.cmpi ne, %13, %c0_i32_7 : i32
    scf.if %14 {
      %c16_i32 = arith.constant 16 : i32
      %18 = arith.muli %arg0, %c16_i32 : i32
      %19 = tpu.iota {dimensions = array<i32: 0>} : vector<16x1xi32>
      %20 = vector.broadcast %18 : i32 to vector<16x1xi32>
      %21 = arith.addi %20, %19 : vector<16x1xi32>
      %c40_i32 = arith.constant 40 : i32
      %22 = vector.broadcast %c40_i32 : i32 to vector<16x1xi32>
      %23 = arith.cmpi slt, %21, %22 : vector<16x1xi32>
      %cst_10 = arith.constant 0.000000e+00 : f32
      %24 = vector.shape_cast %23 : vector<16x1xi1> to vector<16x1xi1>
      %25 = vector.broadcast %24 : vector<16x1xi1> to vector<16x256xi1>
      %26 = vector.broadcast %cst_10 : f32 to vector<16x256xf32>
      %27 = arith.select %25, %8, %26 : vector<16x256xi1>, vector<16x256xf32>
      %28 = vector.shape_cast %27 : vector<16x256xf32> to vector<2x8x256xf32>
      %c0_11 = arith.constant 0 : index
      %c0_12 = arith.constant 0 : index
      %29 = vector.load %arg6[%c0_11, %c0_12] : memref<8x256xf32, #tpu.memory_space<vmem>>, vector<8x256xf32>
      %cst_13 = arith.constant dense<0.000000e+00> : vector<8x256xf32>
      %30 = vector.multi_reduction <add>, %28, %cst_13 [0] : vector<2x8x256xf32> to vector<8x256xf32>
      %31 = arith.addf %29, %30 : vector<8x256xf32>
      %c0_14 = arith.constant 0 : index
      %c0_15 = arith.constant 0 : index
      %32 = vector.load %arg6[%c0_14, %c0_15] : memref<8x256xf32, #tpu.memory_space<vmem>>, vector<8x256xf32>
      tpu.vector_store %arg6[%c0_14, %c0_15], %31 {strides = array<i32>} : memref<8x256xf32, #tpu.memory_space<vmem>>, vector<8x256xf32>,
    } else {
    }
    %c2_i32_8 = arith.constant 2 : i32
    %15 = arith.cmpi eq, %arg0, %c2_i32_8 : i32
    %16 = arith.extui %15 : i1 to i32
    %c0_i32_9 = arith.constant 0 : i32
    %17 = arith.cmpi ne, %16, %c0_i32_9 : i32
    scf.if %17 {
      %c0_10 = arith.constant 0 : index
      %c0_11 = arith.constant 0 : index
      %18 = vector.load %arg6[%c0_10, %c0_11] : memref<8x256xf32, #tpu.memory_space<vmem>>, vector<8x256xf32>
      %cst_12 = arith.constant dense<0.000000e+00> : vector<256xf32>
      %19 = vector.multi_reduction <add>, %18, %cst_12 [0] : vector<8x256xf32> to vector<256xf32>
      %20 = vector.shape_cast %19 : vector<256xf32> to vector<1x256xf32>
      %cst_13 = arith.constant 2.500000e-02 : f32
      %21 = vector.broadcast %cst_13 : f32 to vector<1x256xf32>
      %22 = arith.mulf %20, %21 : vector<1x256xf32>
      %c0_14 = arith.constant 0 : index
      %c0_15 = arith.constant 0 : index
      %23 = vector.load %arg3[%c0_14, %c0_15] : memref<256x2xf32, #tpu.memory_space<vmem>>, vector<256x2xf32>
      %cst_16 = arith.constant dense<0.000000e+00> : vector<1x2xf32>
      %24 = tpu.matmul %22, %23, %cst_16 {dimension_numbers = #tpu.dot_dimension_numbers<[1], [0], [0], [1], [0, 0, 1, 1], [], []>} : vector<1x256xf32>, vector<256x2xf32>, vector<1x2xf32> -> vector<1x2xf32>
      %c0_17 = arith.constant 0 : index
      %c0_18 = arith.constant 0 : index
      %25 = vector.load %arg4[%c0_17, %c0_18] : memref<1x2xf32, #tpu.memory_space<vmem>>, vector<1x2xf32>
      %26 = arith.addf %24, %25 : vector<1x2xf32>
      %c0_19 = arith.constant 0 : index
      %c0_20 = arith.constant 0 : index
      %27 = vector.load %arg5[%c0_19, %c0_20] : memref<1x2xf32, #tpu.memory_space<vmem>>, vector<1x2xf32>
      tpu.vector_store %arg5[%c0_19, %c0_20], %26 {strides = array<i32>} : memref<1x2xf32, #tpu.memory_space<vmem>>, vector<1x2xf32>,
    } else {
    }
    return
  }
  func.func @transform_0(%arg0: i32) -> (i32, i32) {
    %c0_i32 = arith.constant 0 : i32
    %c0_i32_0 = arith.constant 0 : i32
    return %arg0, %c0_i32 : i32, i32
  }
  func.func @transform_1(%arg0: i32) -> (i32, i32) {
    %c0_i32 = arith.constant 0 : i32
    %c0_i32_0 = arith.constant 0 : i32
    %c0_i32_1 = arith.constant 0 : i32
    return %c0_i32, %c0_i32_0 : i32, i32
  }
  func.func @transform_2(%arg0: i32) -> (i32, i32) {
    %c0_i32 = arith.constant 0 : i32
    %c0_i32_0 = arith.constant 0 : i32
    %c0_i32_1 = arith.constant 0 : i32
    return %c0_i32, %c0_i32_0 : i32, i32
  }
  func.func @transform_3(%arg0: i32) -> (i32, i32) {
    %c0_i32 = arith.constant 0 : i32
    %c0_i32_0 = arith.constant 0 : i32
    %c0_i32_1 = arith.constant 0 : i32
    return %c0_i32, %c0_i32_0 : i32, i32
  }
  func.func @transform_4(%arg0: i32) -> (i32, i32) {
    %c0_i32 = arith.constant 0 : i32
    %c0_i32_0 = arith.constant 0 : i32
    %c0_i32_1 = arith.constant 0 : i32
    return %c0_i32, %c0_i32_0 : i32, i32
  }
}

</mosaic_0001>

<bundles_post_ra>
// kernel: tpu_custom_call.1
= control target key start
LH: loop header
LB: loop body
LE: loop exit
PB: predicated region body
PF: predicated region fallthrough
CT: control target
= control target key end

     0   :  { %9 = vsyncpa [#allocation4], 0  ;;  %s708_s15 = smov 0   ;;  %s876_s0 = inlined_call_operand.vmem [shape: f32[40,64], index: 0, kind: input, shape index: {}]   ;;  %s877_s1 = inlined_call_operand.vmem [shape: bf16[64,256], index: 1, kind: input, shape index: {}]   ;;  %s878_s2 = inlined_call_operand.vmem [shape: f32[256,2], index: 2, kind: input, shape index: {}]   ;;  %s879_s3 = inlined_call_operand.vmem [shape: f32[1,2], index: 3, kind: input, shape index: {}]   ;;  %s880_s4 = inlined_call_operand.hbm [shape: f32[1,2], index: 4, kind: output, shape index: {}]  }
   0x1 LB: > { %s714_s16 = sadd.s32 4294967295, %s678_s15   ;;  %p526_p0 = scmp.ge.s32.totalorder %s678_s15, 1  ;;  %s678_s15 = sphi %s708_s15, %s15_s15  }
   0x2   : > { %p167_p1 = scmp.lt.s32.totalorder %s678_s15, 4 }
   0x4   : > { %p168_p2 = pnand %p526_p0, %p167_p1 }
   0x5   : > { %s527_s17 = sshll.u32 (!%p168_p2), %s714_s16, 1  ;;  %p529_p4 = scmp.ne.s32.totalorder (!%p168_p2), %s714_s16, 0 }
   0x6   : > { %171 = sbr.rel (%p168_p2) target bundleno = 538 (0x21a), region = 36  ;;  %p197_p3 = scmp.lt.s32.totalorder (!%p168_p2), %s527_s17, 4 }
   0xd   : > { %s882_s17 = smov (!%p197_p3, %s527_s17), 4  ;;  %210 = sbr.rel (%p529_p4) target bundleno = 20 (0x14), region = 40 }
   0xe   : > { %s528_s18 = sshll.u32 %s882_s17, 3  ;;  %v680_v0 = vmov (!%p529_p4), 0.0  }
   0xf   : > { %s200_s21 = scalar_lea.vmem %s876_s0, %s528_s18  ;;  %211 = vst [vmem:[#allocation2] sm:$0xff] (!%p529_p4), %v680_v0  ;;  %212 = vst [vmem:[#allocation2 + $0x8] sm:$0xff] (!%p529_p4), %v680_v0 }
  0x14 PF: > { %v630_v1 = vld [vmem:[%s877_s1 + $0x4] ss:$8 sps:$4 sm:$0xff]   ;;  %v632_v2 = vld [vmem:[%s877_s1] ss:$8 sps:$4 sm:$0xff]   ;;  %v681_v3 = vmov 0   ;;  %vm264_vm0 = vcmask 523264  }
  0x15   : > { %300 = vmatprep.mubr.bf16.mxu0 %v681_v3  ;;  %268 = vmatprep.subr.bf16.mxu0 %v630_v1  ;;  %v633_v4 = vld [vmem:[%s877_s1 + $0x14] ss:$8 sps:$4 sm:$0xff]   ;;  %v635_v5 = vld [vmem:[%s877_s1 + $0x10] ss:$8 sps:$4 sm:$0xff]   ;;  %v636_v6 = vld [vmem:[%s877_s1 + $0x24] ss:$8 sps:$4 sm:$0xff]  }
  0x16   : > { %269 = vmatpush1.bf16.msra.mxu0 %v632_v2  ;;  %v638_v7 = vld [vmem:[%s877_s1 + $0x20] ss:$8 sps:$4 sm:$0xff]   ;;  %v639_v8 = vld [vmem:[%s877_s1 + $0x34] ss:$8 sps:$4 sm:$0xff]   ;;  %v641_v9 = vld [vmem:[%s877_s1 + $0x30] ss:$8 sps:$4 sm:$0xff]  }
  0x17   : > { %270 = vmatprep.subr.bf16.mxu0 %v633_v4  ;;  %v213_v10 = vld [vmem:[%s200_s21] sm:$0xff]  ;;  %v214_v11 = vld [vmem:[%s200_s21 + $0x8] sm:$0xff]  ;;  %p539_p5 = scmp.eq.s32.totalorder %s714_s16, 2 }
  0x18   : > { %v215_v12 = vpack.c.bf16 %v214_v11, %v213_v10  ;;  %v319_v21 = vld [vmem:[#allocation2] sm:$0xff] (!%p539_p5)  ;;  %v320_v23 = vld [vmem:[#allocation2 + $0x8] sm:$0xff] (!%p539_p5) }
  0x1a   : > { %271 = vmatpush1.bf16.msra.mxu0 %v635_v5 }
  0x1b   : > { %272 = vmatprep.subr.bf16.mxu0 %v636_v6 }
  0x1e   : > { %273 = vmatpush1.bf16.msra.mxu0 %v638_v7 }
  0x1f   : > { %274 = vmatprep.subr.bf16.mxu0 %v639_v8 }
  0x22   : > { %275 = vmatpush1.bf16.msra.mxu0 %v641_v9 }
  0x25   : > { %538 = vmatmul.mubr.msk.bf16.vlgmr.msra.gmra.mrb[0].mxu0 %vm264_vm0, %v215_v12 }
  0xf6   : > { %318 = sbr.rel (%p539_p5) target bundleno = 259 (0x103), region = 44 }
  0xf8   : > { %v302_v13 = vpop.f32.mrb[0].mxu0 }
  0xf9   : > { %v311_v14 = vmax.f32 %v302_v13, 0.0  ;;  %v304_v15 = vpop.f32.mrb[1].mxu0 }
  0xfa   : > { %v312_v16 = vmax.f32 %v304_v15, 0.0  ;;  %v306_v17 = vpop.f32.mrb[2].mxu0 }
  0xfb   : > { %v313_v18 = vmax.f32 %v306_v17, 0.0  ;;  %v308_v19 = vpop.f32.mrb[3].mxu0 }
  0xfc   : > { %v314_v20 = vmax.f32 %v308_v19, 0.0 }
  0xfd   : > { %v321_v22 = vadd.f32 %v313_v18, %v311_v14 }
  0xfe   : > { %v322_v24 = vadd.f32 %v314_v20, %v312_v16 }
  0xff   : > { %v323_v25 = vadd.f32 %v321_v22, %v319_v21 }
 0x100   : > { %v324_v26 = vadd.f32 %v322_v24, %v320_v23 }
 0x101   : > { %325 = vst [vmem:[#allocation2] sm:$0xff] %v323_v25 }
 0x102   : > { %326 = vst [vmem:[#allocation2 + $0x8] sm:$0xff] %v324_v26 }
 0x103 PF: > { %p540_p6 = scmp.ne.s32.totalorder %s714_s16, 2 }
 0x104   : > { %v388_v27 = vld [vmem:[%s878_s2 + $0x80] sm:$0xff] (!%p540_p6)  ;;  %v389_v28 = vld [vmem:[%s878_s2 + $0x88] sm:$0xff] (!%p540_p6)  ;;  %s541_s20 = sshll.u32 (!%p540_p6), %s714_s16, 4  ;;  %v332_v30 = vlaneseq (!%p540_p6)  ;;  %v390_v33 = vld [vmem:[%s878_s2 + $0x90] sm:$0xff] (!%p540_p6)  ;;  %vm475_vm3 = vcmask (!%p540_p6), 8192  }
 0x105   : > { %330 = sbr.rel (%p540_p6) target bundleno = 513 (0x201), region = 48  ;;  %v372_v29 = vld [vmem:[%s878_s2] sm:$0xff] (!%p540_p6)  ;;  %v581_v31 = vpack.c.bf16 (!%p540_p6), %v389_v28, %v388_v27  ;;  %v373_v32 = vld [vmem:[%s878_s2 + $0x8] sm:$0xff] (!%p540_p6)  ;;  %v391_v34 = vld [vmem:[%s878_s2 + $0x98] sm:$0xff] (!%p540_p6)  ;;  %v335_v35 = vstv (!%p540_p6), %s541_s20 }
 0x106   : > { %v583_v36 = vpack.c.bf16 (!%p540_p6), %v373_v32, %v372_v29  ;;  %v585_v37 = vpack.c.bf16 (!%p540_p6), %v391_v34, %v390_v33  ;;  %v374_v38 = vld [vmem:[%s878_s2 + $0x10] sm:$0xff] (!%p540_p6)  ;;  %v375_v39 = vld [vmem:[%s878_s2 + $0x18] sm:$0xff] (!%p540_p6)  ;;  %v392_v40 = vld [vmem:[%s878_s2 + $0xa0] sm:$0xff] (!%p540_p6)  ;;  %v333_v41 = vshrl.u32 (!%p540_p6), %v332_v30, 7 }
 0x107   : > { %582 = vmatprep.subr.bf16.mxu0 (!%p540_p6), %v581_v31  ;;  %v393_v42 = vld [vmem:[%s878_s2 + $0xa8] sm:$0xff] (!%p540_p6)  ;;  %v587_v43 = vpack.c.bf16 (!%p540_p6), %v375_v39, %v374_v38  ;;  %v376_v47 = vld [vmem:[%s878_s2 + $0x20] sm:$0xff] (!%p540_p6)  ;;  %v394_v49 = vld [vmem:[%s878_s2 + $0xb0] sm:$0xff] (!%p540_p6) }
 0x108   : > { %584 = vmatpush3.bf16.msra.mxu0 (!%p540_p6), %v583_v36  ;;  %v334_v44 = vadd.s32 (!%p540_p6), 8, %v333_v41  ;;  %v336_v45 = vadd.s32 (!%p540_p6), %v335_v35, %v333_v41  ;;  %v589_v46 = vpack.c.bf16 (!%p540_p6), %v393_v42, %v392_v40  ;;  %v377_v48 = vld [vmem:[%s878_s2 + $0x28] sm:$0xff] (!%p540_p6)  ;;  %v395_v50 = vld [vmem:[%s878_s2 + $0xb8] sm:$0xff] (!%p540_p6)  ;;  %v378_v56 = vld [vmem:[%s878_s2 + $0x30] sm:$0xff] (!%p540_p6) }
 0x109   : > { %586 = vmatprep.subr.bf16.mxu0 (!%p540_p6), %v585_v37  ;;  %v591_v54 = vpack.c.bf16 (!%p540_p6), %v377_v48, %v376_v47  ;;  %v593_v55 = vpack.c.bf16 (!%p540_p6), %v395_v50, %v394_v49  ;;  %v379_v57 = vld [vmem:[%s878_s2 + $0x38] sm:$0xff] (!%p540_p6)  ;;  %v396_v60 = vld [vmem:[%s878_s2 + $0xc0] sm:$0xff] (!%p540_p6)  ;;  %v397_v61 = vld [vmem:[%s878_s2 + $0xc8] sm:$0xff] (!%p540_p6) }
 0x10a   : > { %v337_v51 = vadd.s32 (!%p540_p6), %v335_v35, %v334_v44  ;;  %vm338_vm1 = vcmp.lt.s32.totalorder (!%p540_p6), %v336_v45, 40  ;;  %v349_v62 = vld [vmem:[#allocation2 + $0x8] sm:$0xff] (!%p540_p6)  ;;  %v348_v1 = vld [vmem:[#allocation2] sm:$0xff] (!%p540_p6)  ;;  %v595_v2 = vpack.c.bf16 (!%p540_p6), %v379_v57, %v378_v56  ;;  %v597_v5 = vpack.c.bf16 (!%p540_p6), %v397_v61, %v396_v60  ;;  %v398_v8 = vld [vmem:[%s878_s2 + $0xd0] sm:$0xff] (!%p540_p6) }
 0x10b   : > { %v344_v52 = vsel (!%p540_p6), %vm338_vm1, %v311_v14, 0.0  ;;  %v345_v53 = vsel (!%p540_p6), %vm338_vm1, %v312_v16, 0.0  ;;  %v380_v6 = vld [vmem:[%s878_s2 + $0x40] sm:$0xff] (!%p540_p6)  ;;  %v381_v7 = vld [vmem:[%s878_s2 + $0x48] sm:$0xff] (!%p540_p6)  ;;  %v399_v9 = vld [vmem:[%s878_s2 + $0xd8] sm:$0xff] (!%p540_p6) }
 0x10c   : > { %588 = vmatpush3.bf16.msra.mxu0 %v587_v43  ;;  %vm339_vm2 = vcmp.lt.s32.totalorder %v337_v51, 40  ;;  %v599_v12 = vpack.c.bf16 %v381_v7, %v380_v6  ;;  %v601_v15 = vpack.c.bf16 %v399_v9, %v398_v8  ;;  %v382_v16 = vld [vmem:[%s878_s2 + $0x50] sm:$0xff]  ;;  %v383_v17 = vld [vmem:[%s878_s2 + $0x58] sm:$0xff]  ;;  %v401_v19 = vld [vmem:[%s878_s2 + $0xe8] sm:$0xff] }
 0x10d   : > { %590 = vmatprep.subr.bf16.mxu0 %v589_v46  ;;  %v346_v58 = vsel %vm339_vm2, %v313_v18, 0.0  ;;  %v347_v59 = vsel %vm339_vm2, %v314_v20, 0.0  ;;  %v400_v18 = vld [vmem:[%s878_s2 + $0xe0] sm:$0xff]  ;;  %v603_v22 = vpack.c.bf16 %v383_v17, %v382_v16  ;;  %v385_v27 = vld [vmem:[%s878_s2 + $0x68] sm:$0xff]  ;;  %v402_v28 = vld [vmem:[%s878_s2 + $0xf0] sm:$0xff] }
 0x10e   : > { %v351_v63 = vadd.f32 %v347_v59, %v345_v53  ;;  %v350_v0 = vadd.f32 %v346_v58, %v344_v52  ;;  %v605_v25 = vpack.c.bf16 %v401_v19, %v400_v18  ;;  %v384_v26 = vld [vmem:[%s878_s2 + $0x60] sm:$0xff]  ;;  %v403_v29 = vld [vmem:[%s878_s2 + $0xf8] sm:$0xff]  ;;  %v386_v35 = vld [vmem:[%s878_s2 + $0x70] sm:$0xff] }
 0x10f   : > { %v607_v32 = vpack.c.bf16 %v385_v27, %v384_v26  ;;  %v609_v34 = vpack.c.bf16 %v403_v29, %v402_v28  ;;  %v387_v36 = vld [vmem:[%s878_s2 + $0x78] sm:$0xff]  ;;  %v404_v42 = vld [vmem:[%s879_s3] sm:$0x1] }
 0x110   : > { %592 = vmatpush3.bf16.msra.mxu0 %v591_v54  ;;  %v353_v3 = vadd.f32 %v351_v63, %v349_v62  ;;  %v352_v4 = vadd.f32 %v350_v0, %v348_v1  ;;  %v611_v39 = vpack.c.bf16 %v387_v36, %v386_v35 }
 0x111   : > { %594 = vmatprep.subr.bf16.mxu0 %v593_v55 }
 0x112   : > { %355 = vst [vmem:[#allocation2 + $0x8] sm:$0xff] %v353_v3  ;;  %v364_v10 = vrot.slane %v353_v3, 4  ;;  %354 = vst [vmem:[#allocation2] sm:$0xff] %v352_v4  ;;  %v358_v11 = vrot.slane %v352_v4, 4 }
 0x114   : > { %596 = vmatpush3.bf16.msra.mxu0 %v595_v2  ;;  %v365_v13 = vadd.f32 %v364_v10, %v353_v3  ;;  %v359_v14 = vadd.f32 %v358_v11, %v352_v4 }
 0x115   : > { %598 = vmatprep.subr.bf16.mxu0 %v597_v5 }
 0x116   : > { %v366_v20 = vrot.slane %v365_v13, 2  ;;  %v360_v21 = vrot.slane %v359_v14, 2 }
 0x118   : > { %600 = vmatpush3.bf16.msra.mxu0 %v599_v12  ;;  %v367_v23 = vadd.f32 %v366_v20, %v365_v13  ;;  %v361_v24 = vadd.f32 %v360_v21, %v359_v14 }
 0x119   : > { %602 = vmatprep.subr.bf16.mxu0 %v601_v15 }
 0x11a   : > { %v368_v30 = vrot.slane %v367_v23, 1  ;;  %v362_v31 = vrot.slane %v361_v24, 1 }
 0x11c   : > { %604 = vmatpush3.bf16.msra.mxu0 %v603_v22  ;;  %v369_v33 = vadd.f32 %v368_v30, %v367_v23  ;;  %v363_v38 = vadd.f32 %v362_v31, %v361_v24 }
 0x11d   : > { %606 = vmatprep.subr.bf16.mxu0 %v605_v25 }
 0x11e   : > { %v371_v37 = vmul.f32 0.025, %v369_v33  ;;  %v370_v40 = vmul.f32 0.025, %v363_v38 }
 0x120   : > { %608 = vmatpush3.bf16.msra.mxu0 %v607_v32  ;;  %469 = vmatprep.mubr.f32.mxu0 %v371_v37 }
 0x121   : > { %610 = vmatprep.subr.bf16.mxu0 %v609_v34 }
 0x124   : > { %612 = vmatpush3.bf16.msra.mxu0 %v611_v39 }
 0x127   : > { %470 = vmatmul.mubr.f32.vlgmr.msra.gmra.mrb[0].mxu0 %v370_v40 }
 0x1fa   : > { %v578_v41 = vpop.f32.mrb[0].mxu0 }
 0x1fb   : > { %v579_v43 = vpop.f32.mrb[1].mxu0 }
 0x1fc   : > { %v580_v44 = vadd.f32 %v579_v43, %v578_v41 }
 0x1fe   : > { %v472_v45 = vadd.f32 %v580_v44, %v404_v42 }
 0x200   : > { %476 = vst.msk [vmem:[#allocation3] sm:$0x1] %vm475_vm3, %v472_v45 }
 0x201 PF: > { %s682_s7 = smov [#allocation3]  }
 0x202   : > { %s484_s8 = sshll.u32 %s682_s7, 4  ;;  %s485_s8 = int_to_ptr.vmem [resolvable:$true] %s484_s8 }
 0x203   : > { %s642_s9 = scalar_lea.vmem %s485_s8, 16  ;;  %s648_s10 = scalar_lea.vmem %s485_s8, 32 }
 0x204   : > { %p643_p7 = scmp.ne.s32.totalorder %s485_s8, %s642_s9  ;;  %p649_p10 = scmp.lt.s32.totalorder %s485_s8, %s485_s8 }
 0x205   : > { %p650_p11 = scmp.lt.s32.totalorder %s648_s10, %s642_s9 }
 0x206   : > { %p644_p8 = pnand %p643_p7, %p539_p5 }
 0x207   : > { %p651_p12 = por %p650_p11, %p649_p10 }
 0x208   : > { %p645_p9 = pneg %p644_p8 }
 0x20a   : > { %p652_p13 = pnand %p651_p12, %p645_p9 }
 0x20c   : > { %655 = shalt.err (!%p652_p13)
}
 0x20d   : > { %s656_s13 = scalar_lea.hbm %s880_s4, 16 }
 0x20e   : > { %p657_p0 = scmp.ne.s32.totalorder %s880_s4, %s656_s13  ;;  %p662_p3 = scmp.lt.u32.totalorder %s656_s13, %s880_s4 }
 0x210   : > { %p658_p1 = pnand %p657_p0, %p539_p5 }
 0x212   : > { %p659_p2 = pneg %p658_p1 }
 0x214   : > { %p664_p4 = pnand %p662_p3, %p659_p2 }
 0x216   : > { %667 = shalt.err (!%p664_p4)
}
 0x217   : > { %614 = dma.vmem_to_hbm [thread:$0]  (%p539_p5), %s485_s8, 16, %s880_s4, [#allocation4]  }
 0x218   : > { %673 = dma.done.wait (%p539_p5), [#allocation4], 16  }
 0x219   : > { %675 = vsyncadd (%p539_p5), [#allocation4], 4294967280 }
 0x21a PF: > { %s15_s15 = sadd.s32 1, %s678_s15  }
 0x21b   : > { %p12_p6 = scmp.ge.s32.totalorder %s15_s15, 5  }
 0x21d   :  { %14 = sbr.rel (!%p12_p6) target bundleno = 1 (0x1), region = 75 }
 0x224   :  { %497 = vsyncpa [#allocation4], 1 }
 0x225   :  { %499 = vsyncpa [#allocation4 + $0x1], 1 }

</bundles_post_ra>
